<compile_context>
chip_gen: v6e
topology: v6e:2x2x1
jax: 0.10.0
libtpu: 0.0.40
codegen_flags: <defaults>
</compile_context>

<pallas_src>
import jax
import jax.numpy as jnp
from jax.experimental import pallas as pl
from jax.experimental.pallas import tpu as pltpu


# ------------------------------ Pallas kernel -------------------------------

def _cond_add_kernel(x_ref, c_ref, o_ref):
    """out = x + cond, x block (rt, ts), cond block (rt, 1); native dtype, lane broadcast."""
    o_ref[...] = x_ref[...] + c_ref[...]


# ------------------------------ tile selection -------------------------------

def _round_up(v, m):
    return ((v + m - 1) // m) * m


def _choose_tiles(rows, s, itemsize, *, max_block_bytes=2 << 20, max_lanes=4096):
    """Pick (row_tile, lane_tile) obeying TPU (8,128) tiling and the VMEM budget."""
    sub = {4: 8, 2: 16, 1: 32}.get(int(itemsize), 8)

    # Lane (spatial) tile: multiple of 128, as large as practical (>=512-1024 when possible).
    if s < 128:
        ts = s                                        # full-dim block (allowed)
    else:
        ts = min(max_lanes, _round_up(s, 128))

    # Row (sublane) tile: multiple of `sub`, capped by the per-block byte budget.
    if rows <= sub:
        rt = rows                                     # full-dim block (allowed)
    else:
        rt_cap = max(sub, (max_block_bytes // max(ts * itemsize, 1)) // sub * sub)
        rt = min(_round_up(rows, sub), rt_cap)

    # Keep at least a couple of grid steps so v7x megacore has work to shard.
    grid_r = pl.cdiv(rows, rt)
    grid_s = pl.cdiv(s, ts)
    while grid_r * grid_s < 2 and rt > sub:
        new_rt = max(sub, _round_up(rt // 2, sub))
        if new_rt == rt:
            break
        rt = new_rt
        grid_r = pl.cdiv(rows, rt)
    return rt, ts


# ------------------------------ Pallas wrapper -------------------------------

def conditioning_add(x_2d, cond_col, *, max_block_bytes=2 << 20):
    """out = x + cond on a lane-dense (rows, S) view; cond_col is (rows, 1) in x.dtype."""
    rows, s = x_2d.shape
    itemsize = jnp.dtype(x_2d.dtype).itemsize
    rt, ts = _choose_tiles(rows, s, itemsize, max_block_bytes=max_block_bytes)
    grid = (pl.cdiv(rows, rt), pl.cdiv(s, ts))

    # Double-buffered in/out blocks + the tiny cond column; clamp into a range that is safe on
    # v5e (16 MiB scoped default, 128 MiB phys) through v7x (32 MiB default, 64 MiB phys).
    need = 2 * (2 * rt * ts * itemsize + rt * itemsize)
    vmem_limit = int(min(max(4 * need, 16 << 20), 48 << 20))

    return pl.pallas_call(
        _cond_add_kernel,
        out_shape=jax.ShapeDtypeStruct((rows, s), x_2d.dtype),
        grid=grid,
        in_specs=[pl.BlockSpec((rt, ts), lambda r, t: (r, t)),
                  pl.BlockSpec((rt, 1), lambda r, t: (r, 0))],
        out_specs=pl.BlockSpec((rt, ts), lambda r, t: (r, t)),
        compiler_params=pltpu.CompilerParams(
            dimension_semantics=("parallel", "parallel"),
            vmem_limit_bytes=vmem_limit),
    )(x_2d, cond_col)


# -------------------------- embedding glue (tiny, XLA) -----------------------

def timestep_embedding_1d(dim, t):
    # t: (...,) -> (..., dim)
    half = dim // 2
    freqs = jnp.exp(-jnp.log(10000.0) * jnp.arange(half, dtype=jnp.float32) / half)
    args = t[..., None].astype(jnp.float32) * freqs
    return jnp.concatenate([jnp.cos(args), jnp.sin(args)], axis=-1)


def abs_pos_embedding_3d(dim, offset):
    # offset: (3,) crop offset -> (dim,) embedding at grid position (0,0,0)+offset
    d_axis = dim // 3
    half = d_axis // 2
    freqs = jnp.exp(-jnp.log(10000.0) * jnp.arange(half, dtype=jnp.float32) / half)
    parts = []
    for ax in range(3):
        a = offset[ax].astype(jnp.float32) * freqs
        parts.append(jnp.concatenate([jnp.sin(a), jnp.cos(a)], axis=-1))
    return jnp.concatenate(parts, axis=-1)


def _mlp(v, w1, b1, w2, b2):
    h = v @ w1 + b1
    h = h * jax.nn.sigmoid(h)                           # SiLU
    return h @ w2 + b2


def compute_cond(params, t_emb, spacings, off_emb, guidance):
    """Per-(batch, channel) conditioning vector (B, C) — tiny matmuls, left to XLA."""
    cn = _mlp(t_emb, params['noise_w1'], params['noise_b1'],
              params['noise_w2'], params['noise_b2'])
    cs = _mlp(spacings, params['spac_w1'], params['spac_b1'],
              params['spac_w2'], params['spac_b2'])
    co = _mlp(off_emb, params['off_w1'], params['off_b1'],
              params['off_w2'], params['off_b2'])
    return (guidance[0][:, None] * cn
            + guidance[1][:, None] * cs
            + guidance[2][:, None] * co)


# ------------------------------- parameters ----------------------------------

def init_params(key, c_out):
    keys = jax.random.split(key, 12)
    it = iter(keys)

    def w(shape, scale=0.05):
        return (scale * jax.random.normal(next(it), shape)).astype(jnp.float32)

    p = {}
    p['noise_w1'] = w((c_out, c_out)); p['noise_b1'] = w((1, c_out))
    p['noise_w2'] = w((c_out, c_out)); p['noise_b2'] = w((1, c_out))
    p['spac_w1'] = w((3, c_out));      p['spac_b1'] = w((1, c_out))
    p['spac_w2'] = w((c_out, c_out));  p['spac_b2'] = w((1, c_out))
    p['off_w1'] = w((c_out, c_out));   p['off_b1'] = w((1, c_out))
    p['off_w2'] = w((c_out, c_out));   p['off_b2'] = w((1, c_out))
    return p


# --------------------------- Conditioning forward ----------------------------

@jax.jit
def conditioning_forward(params, x, noise_params, spacings, offsets, guidance):
    # x: (B, C, D, H, W) — PyTorch NCDHW; flattens contiguously to a lane-dense 2D view.
    B, C, D, H, W = x.shape
    S = D * H * W
    assert C % 2 == 0 and C % 6 == 0, "out_channels must be even and divisible by 6"

    # Embedding construction is tiny transcendental glue (XLA).
    t_emb = timestep_embedding_1d(C, noise_params)[0]                       # (B, C)
    off_emb = jax.vmap(lambda o: abs_pos_embedding_3d(C, o))(offsets)       # (B, C)

    # Tiny MLPs + guidance mix -> per-(batch, channel) conditioning (plain XLA).
    cond = compute_cond(params, t_emb.astype(jnp.float32),
                        spacings.astype(jnp.float32), off_emb,
                        guidance.astype(jnp.float32))                       # (B, C) f32
    cond = cond.astype(x.dtype)                                             # cast once, outside

    # Dominant op: lane-dense broadcast add over the flattened (B*C, S) view.
    out2d = conditioning_add(x.reshape(B * C, S), cond.reshape(B * C, 1))
    return out2d.reshape(B, C, D, H, W)


if __name__ == "__main__":
    B, C = 2, 24            # C divisible by 6 for the 3D pos-embedding split
    D = H = W = 8

    key = jax.random.PRNGKey(0)
    kx, kp, kn, ks, ko, kg = jax.random.split(key, 6)

    params = init_params(kp, C)
    x = jax.random.normal(kx, (B, C, D, H, W), jnp.float32)
    noise_params = jax.random.uniform(kn, (1, B), jnp.float32, 0.0, 1000.0)   # timesteps
    spacings = jax.random.uniform(ks, (B, 3), jnp.float32, 0.5, 2.0)
    offsets = jnp.asarray(jax.random.randint(ko, (B, 3), 0, 64), jnp.float32)
    guidance = jax.random.uniform(kg, (3, B), jnp.float32)

    out = conditioning_forward(params, x, noise_params, spacings, offsets, guidance)
    out = jax.block_until_ready(out)
    assert out.shape == (B, C, D, H, W)
    assert bool(jnp.all(jnp.isfinite(out)))

    # Pure-JAX reference of the same math (correctness guard).
    def ref():
        t_emb = timestep_embedding_1d(C, noise_params)[0]
        off_emb = jax.vmap(lambda o: abs_pos_embedding_3d(C, o))(offsets)

        cn = _mlp(t_emb, params['noise_w1'], params['noise_b1'],
                  params['noise_w2'], params['noise_b2'])
        cs = _mlp(spacings, params['spac_w1'], params['spac_b1'],
                  params['spac_w2'], params['spac_b2'])
        co = _mlp(off_emb, params['off_w1'], params['off_b1'],
                  params['off_w2'], params['off_b2'])
        cond = (guidance[0][:, None] * cn + guidance[1][:, None] * cs
                + guidance[2][:, None] * co)
        return x + cond[:, :, None, None, None]

    ref_out = jax.block_until_ready(ref())
    assert bool(jnp.allclose(out, ref_out, atol=1e-4, rtol=1e-4))
    print("KERNEL_OK")
</pallas_src>

<mosaic_0001>
module attributes {stable_mosaic.version = 11 : i64} {
  func.func @_cond_add_kernel(%arg0: i32, %arg1: i32, %arg2: memref<24x512xf32, #tpu.memory_space<vmem>>, %arg3: memref<24x1xf32, #tpu.memory_space<vmem>>, %arg4: memref<24x512xf32, #tpu.memory_space<vmem>>) attributes {dimension_semantics = [#tpu.dimension_semantics<parallel>, #tpu.dimension_semantics<parallel>], iteration_bounds = array<i64: 2, 1>, scalar_prefetch = 0 : i64, scratch_operands = 0 : i64, tpu.core_type = #tpu.core_type<tc>, window_params = [{transform_indices = @transform_0, window_bounds = array<i64: 24, 512>}, {transform_indices = @transform_1, window_bounds = array<i64: 24, 1>}, {transform_indices = @transform_2, window_bounds = array<i64: 24, 512>}]} {
    %c0 = arith.constant 0 : index
    %c0_0 = arith.constant 0 : index
    %0 = vector.load %arg2[%c0, %c0_0] : memref<24x512xf32, #tpu.memory_space<vmem>>, vector<24x512xf32>
    %c0_1 = arith.constant 0 : index
    %c0_2 = arith.constant 0 : index
    %1 = vector.load %arg3[%c0_1, %c0_2] : memref<24x1xf32, #tpu.memory_space<vmem>>, vector<24x1xf32>
    %2 = vector.broadcast %1 : vector<24x1xf32> to vector<24x512xf32>
    %3 = arith.addf %0, %2 : vector<24x512xf32>
    %c0_3 = arith.constant 0 : index
    %c0_4 = arith.constant 0 : index
    %4 = vector.load %arg4[%c0_3, %c0_4] : memref<24x512xf32, #tpu.memory_space<vmem>>, vector<24x512xf32>
    tpu.vector_store %arg4[%c0_3, %c0_4], %3 {strides = array<i32>} : memref<24x512xf32, #tpu.memory_space<vmem>>, vector<24x512xf32>,
    return
  }
  func.func @transform_0(%arg0: i32, %arg1: i32) -> (i32, i32) {
    %c0_i32 = arith.constant 0 : i32
    return %arg0, %arg1 : i32, i32
  }
  func.func @transform_1(%arg0: i32, %arg1: i32) -> (i32, i32) {
    %c0_i32 = arith.constant 0 : i32
    %c0_i32_0 = arith.constant 0 : i32
    return %arg0, %c0_i32 : i32, i32
  }
  func.func @transform_2(%arg0: i32, %arg1: i32) -> (i32, i32) {
    %c0_i32 = arith.constant 0 : i32
    return %arg0, %arg1 : i32, i32
  }
}

</mosaic_0001>

<bundles_post_ra>
// kernel: conditioning_forward.1
= control target key start
LH: loop header
LB: loop body
LE: loop exit
PB: predicated region body
PF: predicated region fallthrough
CT: control target
= control target key end

     0   :  { %s450_s9 = smov 0   ;;  %s452_s10 = smov 0   ;;  %s500_s0 = inlined_call_operand.vmem [shape: f32[48,512], index: 0, kind: input, shape index: {}]   ;;  %s501_s1 = inlined_call_operand.vmem [shape: f32[48,1], index: 1, kind: input, shape index: {}]   ;;  %s502_s2 = inlined_call_operand.vmem [shape: f32[48,512], index: 2, kind: output, shape index: {}]  }
   0x1   :  { %s454_s11 = smov 0  }
   0x2 LB: > { %s24_s12 = sadd.s32 1, %s428_s10  ;;  %p373_p0 = scmp.ge.s32.totalorder %s432_s11, 1  ;;  %s432_s11 = sphi %s454_s11, %s12_s11   ;;  %s428_s10 = sphi %s452_s10, %s504_s10   ;;  %s424_s9 = sphi %s450_s9, %s503_s9  }
   0x3   : > { %p26_p1 = scmp.ge.s32.totalorder %s24_s12, 2  ;;  %p146_p2 = scmp.lt.s32.totalorder %s432_s11, 3 }
   0x5   : > { %s506_s12 = smov (%p26_p1, %s24_s12), 0  ;;  %p147_p3 = pnand %p373_p0, %p146_p2 }
   0x6   : > { %s183_s13 = smul.u32 (!%p147_p3), 3, %s424_s9 }
   0x7   : > { %150 = sbr.rel (%p147_p3) target bundleno = 149 (0x95), region = 28 }
   0x8   : > { %p185_p4 = scmp.lt.s32.totalorder (!%p147_p3), %s183_s13, 5 }
   0xc   : > { %v434_v0 = vmov 0   ;;  %s508_s13 = smov (!%p185_p4, %s183_s13), 5 }
   0xd   : > { %408 = vset.pattern.permute.xlu0 %v434_v0  ;;  %409 = vset.pattern.permute.xlu1 %v434_v0  ;;  %s376_s14 = sshll.u32 %s508_s13, 3  ;;  %s381_s18 = sshll.u32 %s508_s13, 5 }
   0xe   : > { %s199_s17 = scalar_lea.vmem %s501_s1, %s376_s14  ;;  %s192_s21 = scalar_lea.vmem %s500_s0, %s381_s18 }
   0xf   : > { %v225_v1 = vld [vmem:[%s199_s17] sm:$0xff]  ;;  %v227_v2 = vld [vmem:[%s199_s17 + $0x10] sm:$0xff]  ;;  %v226_v3 = vld [vmem:[%s199_s17 + $0x8] sm:$0xff]  ;;  %s477_s24 = scalar_lea.vmem %s502_s2, %s381_s18 }
  0x10   : > { %230 = vperm.xlu0 %408, %v225_v1   ;;  %240 = vperm.xlu1 %409, %v227_v2   ;;  %v213_v4 = vld [vmem:[%s192_s21] sm:$0xff]  ;;  %v214_v5 = vld [vmem:[%s192_s21 + $0x8] sm:$0xff]  ;;  %v215_v6 = vld [vmem:[%s192_s21 + $0x10] sm:$0xff] }
  0x11   : > { %v216_v7 = vld [vmem:[%s192_s21 + $0x18] sm:$0xff]  ;;  %v217_v9 = vld [vmem:[%s192_s21 + $0x20] sm:$0xff]  ;;  %v222_v16 = vld [vmem:[%s192_s21 + $0x48] sm:$0xff] }
  0x12   : > { %v221_v10 = vld [vmem:[%s192_s21 + $0x40] sm:$0xff]  ;;  %v223_v17 = vld [vmem:[%s192_s21 + $0x50] sm:$0xff]  ;;  %v224_v18 = vld [vmem:[%s192_s21 + $0x58] sm:$0xff] }
  0x13   : > { %v218_v19 = vld [vmem:[%s192_s21 + $0x28] sm:$0xff]  ;;  %v219_v20 = vld [vmem:[%s192_s21 + $0x30] sm:$0xff]  ;;  %v220_v21 = vld [vmem:[%s192_s21 + $0x38] sm:$0xff] }
  0x14   : > { %235 = vperm.xlu0 %408, %v226_v3  }
  0x8b   : > { %v231_v8 = vpop.permute.xlu0 %230  ;;  %v241_v15 = vpop.permute.xlu1 %240 }
  0x8c   : > { %v243_v11 = vadd.f32 %v231_v8, %v213_v4  ;;  %v244_v12 = vadd.f32 %v231_v8, %v214_v5  ;;  %v245_v13 = vadd.f32 %v231_v8, %v215_v6  ;;  %v246_v14 = vadd.f32 %v231_v8, %v216_v7 }
  0x8d   : > { %v251_v23 = vadd.f32 %v241_v15, %v221_v10  ;;  %v252_v24 = vadd.f32 %v241_v15, %v222_v16  ;;  %v253_v25 = vadd.f32 %v241_v15, %v223_v17  ;;  %v254_v26 = vadd.f32 %v241_v15, %v224_v18 }
  0x8e   : > { %255 = vst [vmem:[%s477_s24] sm:$0xff] %v243_v11  ;;  %256 = vst [vmem:[%s477_s24 + $0x8] sm:$0xff] %v244_v12 }
  0x8f   : > { %257 = vst [vmem:[%s477_s24 + $0x10] sm:$0xff] %v245_v13  ;;  %258 = vst [vmem:[%s477_s24 + $0x18] sm:$0xff] %v246_v14  ;;  %v236_v22 = vpop.permute.xlu0 %235 }
  0x90   : > { %v247_v27 = vadd.f32 %v236_v22, %v217_v9  ;;  %v248_v28 = vadd.f32 %v236_v22, %v218_v19  ;;  %v249_v29 = vadd.f32 %v236_v22, %v219_v20  ;;  %v250_v30 = vadd.f32 %v236_v22, %v220_v21  ;;  %263 = vst [vmem:[%s477_s24 + $0x40] sm:$0xff] %v251_v23 }
  0x91   : > { %264 = vst [vmem:[%s477_s24 + $0x48] sm:$0xff] %v252_v24  ;;  %265 = vst [vmem:[%s477_s24 + $0x50] sm:$0xff] %v253_v25 }
  0x92   : > { %259 = vst [vmem:[%s477_s24 + $0x20] sm:$0xff] %v247_v27  ;;  %260 = vst [vmem:[%s477_s24 + $0x28] sm:$0xff] %v248_v28 }
  0x93   : > { %261 = vst [vmem:[%s477_s24 + $0x30] sm:$0xff] %v249_v29  ;;  %262 = vst [vmem:[%s477_s24 + $0x38] sm:$0xff] %v250_v30 }
  0x94   : > { %266 = vst [vmem:[%s477_s24 + $0x58] sm:$0xff] %v254_v26 }
  0x95 PF: > { %s12_s11 = sadd.s32 1, %s432_s11   ;;  %s503_s9 = smov %s428_s10 }
  0x96   : > { %p9_p5 = scmp.ge.s32.totalorder %s12_s11, 4   ;;  %s504_s10 = smov %s506_s12 }
  0x98   :  { %11 = sbr.rel (!%p9_p5) target bundleno = 2 (0x2), region = 61 }

</bundles_post_ra>
